<compile_context>
chip_gen: v7x
topology: tpu7x:2x2x1
jax: 0.10.0
libtpu: 0.0.40
codegen_flags: <defaults>
</compile_context>

<pallas_src>
import functools

import jax
import jax.numpy as jnp
from jax import lax
from jax.experimental import pallas as pl
from jax.experimental.pallas import tpu as pltpu


def _round_down(x, m):
    return (x // m) * m


def _sublane_tile(dtype):
    # native sublane tile: 8 for 4-byte, 16 for 2-byte, 32 for 1-byte dtypes
    return {4: 8, 2: 16, 1: 32}.get(jnp.dtype(dtype).itemsize, 8)


def _label_smoothing_kernel(logit_ref, tgt_ref, out_ref, *,
                            n_rows, row_tile, chunk_rows, chunk_cols,
                            vocab_size, ignore_index, smoothing):
    """One (row_tile, V) logits block -> one (1, 1) partial of sum_r sum_v(-w[r,v]*logit[r,v]).

    Per valid row r (target t, V = vocab_size):
        loss[r] = -( smooth/(V-1) * sum_v logit[r, v]
                     + (conf - smooth/(V-1)) * logit[r, t] )
    Rows with t == ignore_index or global row index >= n_rows contribute 0
    (mask applied to the (rows, 1) result AFTER the lane reduction).
    """
    V = vocab_size
    smooth_val = smoothing / (V - 1)
    conf_minus_smooth = (1.0 - smoothing) - smooth_val
    n_row_chunks = row_tile // chunk_rows
    n_col_chunks = V // chunk_cols

    # hoisted constants (never rebuilt inside the loops)
    lane_iota = lax.broadcasted_iota(jnp.int32, (1, chunk_cols), 1)
    row_iota = lax.broadcasted_iota(jnp.int32, (chunk_rows, 1), 0)
    block_row0 = pl.program_id(0) * row_tile

    def row_body(r, carry):
        r0 = pl.multiple_of(r * chunk_rows, chunk_rows)
        tgt = tgt_ref[pl.ds(r0, chunk_rows), :]                     # (CR, 1) int32
        acc = jnp.zeros((chunk_rows, 1), jnp.float32)
        # static lane slices over the vocab; intermediates bounded to (CR, CV)
        for c in range(n_col_chunks):
            x = logit_ref[pl.ds(r0, chunk_rows), pl.ds(c * chunk_cols, chunk_cols)]
            xf = x.astype(jnp.float32)                              # (CR, CV)
            s_all = jnp.sum(xf, axis=-1, keepdims=True)             # (CR, 1)
            onehot = lane_iota == (tgt - c * chunk_cols)            # (CR, CV)
            s_tgt = jnp.sum(jnp.where(onehot, xf, 0.0), axis=-1, keepdims=True)
            acc = acc + (smooth_val * s_all + conf_minus_smooth * s_tgt)
        # per-row validity (ignore_index + ragged-tail rows) applied after the reduction
        row_ids = block_row0 + r0 + row_iota                        # (CR, 1)
        valid = (tgt != ignore_index) & (row_ids < n_rows)
        return carry + jnp.where(valid, acc, 0.0)

    carry0 = jnp.zeros((chunk_rows, 1), jnp.float32)
    total = lax.fori_loop(0, n_row_chunks, row_body, carry0)
    out_ref[...] = -jnp.sum(total, keepdims=True)                   # (1, 1) partial


def attention_loss(outputs, targets, *, vocab_size, ignore_index, smoothing=0.1,
                   target_block_bytes=8 * 1024 * 1024, max_row_tile=1024,
                   chunk_elems=16 * 1024, max_vocab_chunks=32,
                   vmem_limit_bytes=48 * 1024 * 1024):
    """outputs: (B, T, V) float (f32 or bf16); targets: (B, T) int.  Returns scalar loss.

    Matches the PyTorch reference: mean over ALL rows (ignore_index rows contribute 0).
    """
    V = int(outputs.shape[-1])
    assert V == vocab_size
    logits = outputs.reshape(-1, V)                     # no copy, native dtype (bf16 stays bf16)
    tgts = targets.reshape(-1, 1).astype(jnp.int32)     # (N, 1), tiny
    N = int(logits.shape[0])
    itemsize = jnp.dtype(logits.dtype).itemsize
    sub = _sublane_tile(logits.dtype)

    # --- vocab chunk width: multiple of 128 that divides V, at most max_vocab_chunks chunks
    if V % 128 == 0:
        nlt = V // 128
        m = nlt
        for cand in range(1, nlt + 1):
            if nlt % cand == 0 and (nlt // cand) <= max_vocab_chunks:
                m = cand
                break
        chunk_cols = 128 * m
    else:
        chunk_cols = V          # odd vocab: single full-width chunk

    # --- row chunk: sublane-aligned, bounds per-chunk intermediates to ~chunk_elems elements
    chunk_rows = max(sub, _round_down(max(chunk_elems // chunk_cols, 1), sub))

    # --- Pallas block rows: ~target_block_bytes, multiple of chunk_rows, clipped to N
    desired = target_block_bytes // max(V * itemsize, 1)
    desired = max(chunk_rows, _round_down(min(desired, max_row_tile), chunk_rows))
    tr_cap = _round_down(N, chunk_rows)
    if tr_cap == 0:
        # tiny input: one full-extent block (block dims equal to array dims are always legal)
        row_tile = N
        chunk_rows = N
    else:
        row_tile = min(desired, tr_cap)
    num_blocks = pl.cdiv(N, row_tile)   # last block may be partially out-of-bounds -> masked

    kernel = functools.partial(
        _label_smoothing_kernel,
        n_rows=N, row_tile=row_tile, chunk_rows=chunk_rows, chunk_cols=chunk_cols,
        vocab_size=V, ignore_index=ignore_index, smoothing=smoothing)

    cost = pl.CostEstimate(
        flops=3 * N * V,
        transcendentals=0,
        bytes_accessed=N * V * itemsize + N * 4 + num_blocks * 4)

    partials = pl.pallas_call(
        kernel,
        out_shape=jax.ShapeDtypeStruct((num_blocks, 1), jnp.float32),
        grid=(num_blocks,),
        in_specs=[pl.BlockSpec((row_tile, V), lambda i: (i, 0)),
                  pl.BlockSpec((row_tile, 1), lambda i: (i, 0))],
        out_specs=pl.BlockSpec((1, 1), lambda i: (i, 0)),
        compiler_params=pltpu.CompilerParams(
            dimension_semantics=("parallel",),
            vmem_limit_bytes=vmem_limit_bytes),
        cost_estimate=cost,
    )(logits, tgts)

    # finish the mean in the wrapper (divide by TRUE row count; masked rows contributed 0)
    return jnp.sum(partials) / N


def _reference_loss(outputs, targets, *, vocab_size, ignore_index, smoothing=0.1):
    """Pure-JAX reference matching the PyTorch semantics exactly."""
    logits = outputs.reshape(-1, vocab_size).astype(jnp.float32)
    tgt = targets.reshape(-1).astype(jnp.int32)
    confidence = 1.0 - smoothing
    label = jnp.full_like(logits, smoothing / (vocab_size - 1))
    label = label.at[jnp.arange(logits.shape[0]), tgt].set(confidence)
    label = jnp.where((tgt == ignore_index)[:, None], 0.0, label)
    return jnp.mean(jnp.sum(-label * logits, axis=-1))


if __name__ == "__main__":
    PAD_ID = 0
    SMOOTHING = 0.1
    key = jax.random.PRNGKey(0)

    def make_case(key, B, T, V, dtype):
        k_logit, k_tgt, k_mask = jax.random.split(key, 3)
        outputs = jax.random.normal(k_logit, (B, T, V), dtype=jnp.float32).astype(dtype)
        targets = jax.random.randint(k_tgt, (B, T), 1, V, dtype=jnp.int32)
        pad_mask = jax.random.bernoulli(k_mask, 0.25, (B, T))
        targets = jnp.where(pad_mask, PAD_ID, targets)
        return outputs, targets

    k1, k2, k3, k4 = jax.random.split(key, 4)

    # Case 1: small, single full-extent block, f32
    out1, tgt1 = make_case(k1, 2, 8, 384, jnp.float32)
    loss1 = jax.block_until_ready(
        attention_loss(out1, tgt1, vocab_size=384, ignore_index=PAD_ID,
                       smoothing=SMOOTHING))
    ref1 = _reference_loss(out1, tgt1, vocab_size=384, ignore_index=PAD_ID,
                           smoothing=SMOOTHING)
    assert jnp.allclose(loss1, ref1, rtol=1e-5, atol=1e-5), (loss1, ref1)

    # Case 2: N = 21 rows (non-sublane-aligned full-extent block), f32
    out2, tgt2 = make_case(k2, 3, 7, 256, jnp.float32)
    loss2 = jax.block_until_ready(
        attention_loss(out2, tgt2, vocab_size=256, ignore_index=PAD_ID,
                       smoothing=SMOOTHING))
    ref2 = _reference_loss(out2, tgt2, vocab_size=256, ignore_index=PAD_ID,
                           smoothing=SMOOTHING)
    assert jnp.allclose(loss2, ref2, rtol=1e-5, atol=1e-5), (loss2, ref2)

    # Case 3: bf16 logits streamed directly (f32 accumulation in-kernel)
    out3, tgt3 = make_case(k3, 2, 8, 384, jnp.bfloat16)
    loss3 = jax.block_until_ready(
        attention_loss(out3, tgt3, vocab_size=384, ignore_index=PAD_ID,
                       smoothing=SMOOTHING))
    ref3 = _reference_loss(out3.astype(jnp.float32), tgt3, vocab_size=384,
                           ignore_index=PAD_ID, smoothing=SMOOTHING)
    assert jnp.allclose(loss3, ref3, rtol=1e-4, atol=1e-4), (loss3, ref3)

    # Case 4: N = 300 rows -> multi-block grid, partial (masked) last block,
    # multiple row-chunks and vocab-chunks inside the kernel, f32
    out4, tgt4 = make_case(k4, 5, 60, 256, jnp.float32)
    loss4 = jax.block_until_ready(
        attention_loss(out4, tgt4, vocab_size=256, ignore_index=PAD_ID,
                       smoothing=SMOOTHING))
    ref4 = _reference_loss(out4, tgt4, vocab_size=256, ignore_index=PAD_ID,
                           smoothing=SMOOTHING)
    assert jnp.allclose(loss4, ref4, rtol=1e-5, atol=1e-5), (loss4, ref4)

    print("KERNEL_OK")
</pallas_src>

<mosaic_0001>
module attributes {stable_mosaic.version = 11 : i64} {
  func.func @_label_smoothing_kernel(%arg0: i32, %arg1: memref<16x384xf32, #tpu.memory_space<vmem>>, %arg2: memref<16x1xi32, #tpu.memory_space<vmem>>, %arg3: memref<1x1xf32, #tpu.memory_space<vmem>>) attributes {dimension_semantics = [#tpu.dimension_semantics<parallel>], iteration_bounds = array<i64: 1>, scalar_prefetch = 0 : i64, scratch_operands = 0 : i64, tpu.core_type = #tpu.core_type<tc>, window_params = [{transform_indices = @transform_0, window_bounds = array<i64: 16, 384>}, {transform_indices = @transform_1, window_bounds = array<i64: 16, 1>}, {transform_indices = @transform_2, window_bounds = array<i64: 1, 1>}]} {
    %0 = tpu.iota {dimensions = array<i32: 1>} : vector<1x128xi32>
    %1 = tpu.iota {dimensions = array<i32: 0>} : vector<16x1xi32>
    %c16_i32 = arith.constant 16 : i32
    %2 = arith.muli %arg0, %c16_i32 : i32
    %cst = arith.constant 0.000000e+00 : f32
    %3 = vector.broadcast %cst : f32 to vector<16x1xf32>
    %c0_i32 = arith.constant 0 : i32
    %c16_i32_0 = arith.constant 16 : i32
    %4 = arith.muli %c0_i32, %c16_i32_0 : i32
    %5 = tpu.assume_multiple %4, 16 : i32
    %6 = arith.index_cast %5 : i32 to index
    %c0 = arith.constant 0 : index
    %7 = vector.load %arg2[%6, %c0] : memref<16x1xi32, #tpu.memory_space<vmem>>, vector<16x1xi32>
    %cst_1 = arith.constant 0.000000e+00 : f32
    %8 = vector.broadcast %cst_1 : f32 to vector<16x1xf32>
    %9 = arith.index_cast %5 : i32 to index
    %c0_2 = arith.constant 0 : index
    %10 = vector.load %arg1[%9, %c0_2] : memref<16x384xf32, #tpu.memory_space<vmem>>, vector<16x128xf32>
    %cst_3 = arith.constant dense<0.000000e+00> : vector<16xf32>
    %11 = vector.multi_reduction <add>, %10, %cst_3 [1] : vector<16x128xf32> to vector<16xf32>
    %12 = vector.shape_cast %11 : vector<16xf32> to vector<16x1xf32>
    %c0_i32_4 = arith.constant 0 : i32
    %13 = vector.broadcast %c0_i32_4 : i32 to vector<16x1xi32>
    %14 = arith.subi %7, %13 : vector<16x1xi32>
    %15 = vector.broadcast %0 : vector<1x128xi32> to vector<16x128xi32>
    %16 = vector.broadcast %14 : vector<16x1xi32> to vector<16x128xi32>
    %17 = arith.cmpi eq, %15, %16 : vector<16x128xi32>
    %cst_5 = arith.constant 0.000000e+00 : f32
    %18 = vector.broadcast %cst_5 : f32 to vector<16x128xf32>
    %19 = arith.select %17, %10, %18 : vector<16x128xi1>, vector<16x128xf32>
    %cst_6 = arith.constant dense<0.000000e+00> : vector<16xf32>
    %20 = vector.multi_reduction <add>, %19, %cst_6 [1] : vector<16x128xf32> to vector<16xf32>
    %21 = vector.shape_cast %20 : vector<16xf32> to vector<16x1xf32>
    %cst_7 = arith.constant 2.61096604E-4 : f32
    %22 = vector.broadcast %cst_7 : f32 to vector<16x1xf32>
    %23 = arith.mulf %22, %12 : vector<16x1xf32>
    %cst_8 = arith.constant 0.899738907 : f32
    %24 = vector.broadcast %cst_8 : f32 to vector<16x1xf32>
    %25 = arith.mulf %24, %21 : vector<16x1xf32>
    %26 = arith.addf %23, %25 : vector<16x1xf32>
    %27 = arith.addf %8, %26 : vector<16x1xf32>
    %28 = arith.index_cast %5 : i32 to index
    %c128 = arith.constant 128 : index
    %29 = vector.load %arg1[%28, %c128] : memref<16x384xf32, #tpu.memory_space<vmem>>, vector<16x128xf32>
    %cst_9 = arith.constant dense<0.000000e+00> : vector<16xf32>
    %30 = vector.multi_reduction <add>, %29, %cst_9 [1] : vector<16x128xf32> to vector<16xf32>
    %31 = vector.shape_cast %30 : vector<16xf32> to vector<16x1xf32>
    %c128_i32 = arith.constant 128 : i32
    %32 = vector.broadcast %c128_i32 : i32 to vector<16x1xi32>
    %33 = arith.subi %7, %32 : vector<16x1xi32>
    %34 = vector.broadcast %0 : vector<1x128xi32> to vector<16x128xi32>
    %35 = vector.broadcast %33 : vector<16x1xi32> to vector<16x128xi32>
    %36 = arith.cmpi eq, %34, %35 : vector<16x128xi32>
    %cst_10 = arith.constant 0.000000e+00 : f32
    %37 = vector.broadcast %cst_10 : f32 to vector<16x128xf32>
    %38 = arith.select %36, %29, %37 : vector<16x128xi1>, vector<16x128xf32>
    %cst_11 = arith.constant dense<0.000000e+00> : vector<16xf32>
    %39 = vector.multi_reduction <add>, %38, %cst_11 [1] : vector<16x128xf32> to vector<16xf32>
    %40 = vector.shape_cast %39 : vector<16xf32> to vector<16x1xf32>
    %cst_12 = arith.constant 2.61096604E-4 : f32
    %41 = vector.broadcast %cst_12 : f32 to vector<16x1xf32>
    %42 = arith.mulf %41, %31 : vector<16x1xf32>
    %cst_13 = arith.constant 0.899738907 : f32
    %43 = vector.broadcast %cst_13 : f32 to vector<16x1xf32>
    %44 = arith.mulf %43, %40 : vector<16x1xf32>
    %45 = arith.addf %42, %44 : vector<16x1xf32>
    %46 = arith.addf %27, %45 : vector<16x1xf32>
    %47 = arith.index_cast %5 : i32 to index
    %c256 = arith.constant 256 : index
    %48 = vector.load %arg1[%47, %c256] : memref<16x384xf32, #tpu.memory_space<vmem>>, vector<16x128xf32>
    %cst_14 = arith.constant dense<0.000000e+00> : vector<16xf32>
    %49 = vector.multi_reduction <add>, %48, %cst_14 [1] : vector<16x128xf32> to vector<16xf32>
    %50 = vector.shape_cast %49 : vector<16xf32> to vector<16x1xf32>
    %c256_i32 = arith.constant 256 : i32
    %51 = vector.broadcast %c256_i32 : i32 to vector<16x1xi32>
    %52 = arith.subi %7, %51 : vector<16x1xi32>
    %53 = vector.broadcast %0 : vector<1x128xi32> to vector<16x128xi32>
    %54 = vector.broadcast %52 : vector<16x1xi32> to vector<16x128xi32>
    %55 = arith.cmpi eq, %53, %54 : vector<16x128xi32>
    %cst_15 = arith.constant 0.000000e+00 : f32
    %56 = vector.broadcast %cst_15 : f32 to vector<16x128xf32>
    %57 = arith.select %55, %48, %56 : vector<16x128xi1>, vector<16x128xf32>
    %cst_16 = arith.constant dense<0.000000e+00> : vector<16xf32>
    %58 = vector.multi_reduction <add>, %57, %cst_16 [1] : vector<16x128xf32> to vector<16xf32>
    %59 = vector.shape_cast %58 : vector<16xf32> to vector<16x1xf32>
    %cst_17 = arith.constant 2.61096604E-4 : f32
    %60 = vector.broadcast %cst_17 : f32 to vector<16x1xf32>
    %61 = arith.mulf %60, %50 : vector<16x1xf32>
    %cst_18 = arith.constant 0.899738907 : f32
    %62 = vector.broadcast %cst_18 : f32 to vector<16x1xf32>
    %63 = arith.mulf %62, %59 : vector<16x1xf32>
    %64 = arith.addf %61, %63 : vector<16x1xf32>
    %65 = arith.addf %46, %64 : vector<16x1xf32>
    %66 = arith.addi %2, %5 : i32
    %67 = vector.broadcast %66 : i32 to vector<16x1xi32>
    %68 = arith.addi %67, %1 : vector<16x1xi32>
    %c0_i32_19 = arith.constant 0 : i32
    %69 = vector.broadcast %c0_i32_19 : i32 to vector<16x1xi32>
    %70 = arith.cmpi ne, %7, %69 : vector<16x1xi32>
    %c16_i32_20 = arith.constant 16 : i32
    %71 = vector.broadcast %c16_i32_20 : i32 to vector<16x1xi32>
    %72 = arith.cmpi slt, %68, %71 : vector<16x1xi32>
    %73 = arith.andi %70, %72 : vector<16x1xi1>
    %cst_21 = arith.constant 0.000000e+00 : f32
    %74 = vector.broadcast %cst_21 : f32 to vector<16x1xf32>
    %75 = arith.select %73, %65, %74 : vector<16x1xi1>, vector<16x1xf32>
    %76 = arith.addf %3, %75 : vector<16x1xf32>
    %c1_i32 = arith.constant 1 : i32
    %77 = vector.shape_cast %76 : vector<16x1xf32> to vector<1x16x1xf32>
    %cst_22 = arith.constant dense<0.000000e+00> : vector<1xf32>
    %78 = vector.multi_reduction <add>, %77, %cst_22 [1, 2] : vector<1x16x1xf32> to vector<1xf32>
    %79 = vector.shape_cast %78 : vector<1xf32> to vector<1x1x1xf32>
    %80 = vector.extract %79[0, 0, 0] : f32 from vector<1x1x1xf32>
    %81 = vector.broadcast %80 : f32 to vector<1x1xf32>
    %cst_23 = arith.constant 0.000000e+00 : f32
    %82 = vector.broadcast %cst_23 : f32 to vector<1x1xf32>
    %83 = arith.subf %82, %81 : vector<1x1xf32>
    %c0_24 = arith.constant 0 : index
    %c0_25 = arith.constant 0 : index
    %84 = vector.load %arg3[%c0_24, %c0_25] : memref<1x1xf32, #tpu.memory_space<vmem>>, vector<1x1xf32>
    tpu.vector_store %arg3[%c0_24, %c0_25], %83 {strides = array<i32>} : memref<1x1xf32, #tpu.memory_space<vmem>>, vector<1x1xf32>,
    return
  }
  func.func @transform_0(%arg0: i32) -> (i32, i32) {
    %c0_i32 = arith.constant 0 : i32
    %c0_i32_0 = arith.constant 0 : i32
    return %arg0, %c0_i32 : i32, i32
  }
  func.func @transform_1(%arg0: i32) -> (i32, i32) {
    %c0_i32 = arith.constant 0 : i32
    %c0_i32_0 = arith.constant 0 : i32
    return %arg0, %c0_i32 : i32, i32
  }
  func.func @transform_2(%arg0: i32) -> (i32, i32) {
    %c0_i32 = arith.constant 0 : i32
    %c0_i32_0 = arith.constant 0 : i32
    return %arg0, %c0_i32 : i32, i32
  }
}

</mosaic_0001>

<bundles_post_ra>
// kernel: tpu_custom_call.1
= control target key start
LH: loop header
LB: loop body
LE: loop exit
PB: predicated region body
PF: predicated region fallthrough
CT: control target
= control target key end

     0   :  { %7 = vsyncpa [#allocation3], 0  ;;  %s294_s0 = inlined_call_operand.hbm [shape: f32[16,384], index: 0, kind: input, shape index: {}]   ;;  %s295_s1 = inlined_call_operand.vmem [shape: s32[16,1], index: 1, kind: input, shape index: {}]   ;;  %s296_s2 = inlined_call_operand.hbm [shape: f32[1,1], index: 2, kind: output, shape index: {}]  }
   0x1   :  { %8 = vsyncpa [#allocation4], 0  ;;  %s232_s9 = smov [#allocation2]   ;;  %s184_s13 = scalar_lea.hbm %s294_s0, 768 }
   0x2   :  { %s14_s10 = sshll.u32 %s232_s9, 4  ;;  %p185_p0 = scmp.ne.s32.totalorder %s294_s0, %s184_s13  ;;  %s15_s10 = int_to_ptr.vmem [resolvable:$true] %s14_s10 }
   0x3   :  { %p188_p1 = scmp.lt.u32.totalorder %s184_s13, %s294_s0 }
   0x5   :  { %p190_p2 = pnand %p188_p1, %p185_p0 }
   0x7   :  { %193 = shalt.err (!%p190_p2)
}
   0x8   :  { %s194_s18 = scalar_lea.vmem %s15_s10, 768  ;;  %p199_p4 = scmp.lt.s32.totalorder %s15_s10, %s15_s10 }
   0x9   :  { %p195_p3 = scmp.ne.s32.totalorder %s15_s10, %s194_s18  ;;  %p200_p5 = scmp.lt.s32.totalorder %s194_s18, %s194_s18 }
   0xb   :  { %p201_p6 = por %p200_p5, %p199_p4 }
   0xd   :  { %p202_p7 = pnand %p201_p6, %p195_p3 }
   0xf   :  { %205 = shalt.err (!%p202_p7)
}
  0x10   :  { %s233_s19 = smov 384   ;;  %s234_s20 = smov 24  }
  0x11   :  { %20 = dma.hbm_to_vmem [thread:$0]  %s294_s0, 768, %s15_s10, [#allocation3], %s233_s19, %s233_s19, %s234_s20  }
  0x12   :  { %228 = dma.done.wait [#allocation3], 768  }
  0x13   :  { %229 = vsyncadd [#allocation3], 4294966528  ;;  %v235_v0 = vmov 0   ;;  %v267_v1 = vld [vmem:[%s295_s1] sm:$0xff]  ;;  %v272_v2 = vld [vmem:[%s295_s1 + $0x8] sm:$0xff]  ;;  %v26_v13 = vlaneseq  ;;  %vm139_vm8 = vcmask 7168  }
  0x14   :  { %182 = vset.pattern.permute.xlu0 %v235_v0  ;;  %183 = vset.pattern.permute.xlu1 %v235_v0  ;;  %v171_v3 = vadd.s32 4294967168, %v267_v1  ;;  %v172_v4 = vadd.s32 4294967168, %v272_v2  ;;  %v173_v5 = vadd.s32 4294967040, %v267_v1  ;;  %v174_v6 = vadd.s32 4294967040, %v272_v2  ;;  %v37_v7 = vld [vmem:[#allocation2] sm:$0xff]  ;;  %v38_v9 = vld [vmem:[#allocation2 + $0x18] sm:$0xff] }
  0x15   :  { %44 = vperm.xlu0 %182, %v267_v1   ;;  %v66_v8 = vld [vmem:[#allocation2 + $0x20] sm:$0xff]  ;;  %v96_v10 = vld [vmem:[#allocation2 + $0x28] sm:$0xff]  ;;  %v95_v12 = vld [vmem:[#allocation2 + $0x10] sm:$0xff]  ;;  %v27_v14 = vand.u32 127, %v26_v13  ;;  %vm129_vm6 = vcmp.ne.s32.totalorder %v267_v1, 0  ;;  %vm130_vm7 = vcmp.ne.s32.totalorder %v272_v2, 0 }
  0x16   :  { %74 = vperm.xlu1 %183, %v171_v3   ;;  %v65_v11 = vld [vmem:[#allocation2 + $0x8] sm:$0xff]  ;;  %s236_s0 = smov [#allocation5]   ;;  %vm154_vm9 = vcmask 0  }
  0x17   :  { %s162_s1 = sshll.u32 %s236_s0, 4  ;;  %s163_s1 = int_to_ptr.vmem [resolvable:$true] %s162_s1 }
  0x18   :  { %s206_s28 = scalar_lea.vmem %s163_s1, 16  ;;  %s210_s29 = scalar_lea.vmem %s163_s1, 32 }
  0x19   :  { %47 = vperm.xlu0 %182, %v272_v2   ;;  %p207_p8 = scmp.ne.s32.totalorder %s163_s1, %s206_s28  ;;  %p211_p9 = scmp.lt.s32.totalorder %s163_s1, %s163_s1 }
  0x1a   :  { %77 = vperm.xlu1 %183, %v172_v4   ;;  %p212_p10 = scmp.lt.s32.totalorder %s210_s29, %s206_s28 }
  0x1c   :  { %p213_p11 = por %p212_p10, %p211_p9 }
  0x1d   :  { %104 = vperm.xlu0 %182, %v173_v5  }
  0x1e   :  { %107 = vperm.xlu1 %183, %v174_v6   ;;  %p214_p12 = pnand %p213_p11, %p207_p8 }
  0x3c   :  { %39 = vadd.xlane.f32.xlu0 %v37_v7 }
  0x40   :  { %69 = vadd.xlane.f32.xlu0 %v66_v8 }
  0x42   :  { %41 = vadd.xlane.f32.xlu1 %v38_v9 }
  0x44   :  { %99 = vadd.xlane.f32.xlu0 %v96_v10 }
  0x46   :  { %67 = vadd.xlane.f32.xlu1 %v65_v11 }
  0x4a   :  { %97 = vadd.xlane.f32.xlu1 %v95_v12 }
  0x94   :  { %v45_v15 = vpop.permute.xlu0 %44 }
  0x95   :  { %vm49_vm0 = vcmp.eq.s32.totalorder %v27_v14, %v45_v15  ;;  %v75_v16 = vpop.permute.xlu1 %74 }
  0x96   :  { %v51_v17 = vsel %vm49_vm0, %v37_v7, 0.0  ;;  %vm79_vm1 = vcmp.eq.s32.totalorder %v27_v14, %v75_v16 }
  0x97   :  { %53 = vadd.xlane.f32.xlu0 %v51_v17  ;;  %v81_v19 = vsel %vm79_vm1, %v65_v11, 0.0 }
  0x98   :  { %v48_v18 = vpop.permute.xlu0 %47  ;;  %83 = vadd.xlane.f32.xlu1 %v81_v19 }
  0x99   :  { %vm50_vm2 = vcmp.eq.s32.totalorder %v27_v14, %v48_v18  ;;  %v78_v20 = vpop.permute.xlu1 %77 }
  0x9a   :  { %v52_v21 = vsel %vm50_vm2, %v38_v9, 0.0  ;;  %vm80_vm3 = vcmp.eq.s32.totalorder %v27_v14, %v78_v20 }
  0x9b   :  { %55 = vadd.xlane.f32.xlu0 %v52_v21  ;;  %v82_v25 = vsel %vm80_vm3, %v66_v8, 0.0 }
  0x9c   :  { %v105_v22 = vpop.permute.xlu0 %104 }
  0x9d   :  { %vm109_vm4 = vcmp.eq.s32.totalorder %v27_v14, %v105_v22  ;;  %v108_v23 = vpop.permute.xlu1 %107 }
  0x9e   :  { %v111_v24 = vsel %vm109_vm4, %v95_v12, 0.0  ;;  %vm110_vm5 = vcmp.eq.s32.totalorder %v27_v14, %v108_v23 }
  0x9f   :  { %113 = vadd.xlane.f32.xlu1 %v111_v24  ;;  %85 = vadd.xlane.f32.xlu0 %v82_v25  ;;  %v112_v26 = vsel %vm110_vm5, %v96_v10, 0.0 }
  0xa3   :  { %115 = vadd.xlane.f32.xlu0 %v112_v26 }
  0xc9   :  { %v40_v27 = vpop.xlane.xlu0 %39 }
  0xca   :  { %v57_v39 = vmul.f32 0.0002610966, %v40_v27 }
  0xcd   :  { %v70_v29 = vpop.xlane.xlu0 %69 }
  0xce   :  { %v88_v41 = vmul.f32 0.0002610966, %v70_v29 }
  0xcf   :  { %v42_v28 = vpop.xlane.xlu1 %41 }
  0xd0   :  { %v58_v49 = vmul.f32 0.0002610966, %v42_v28 }
  0xd1   :  { %v100_v31 = vpop.xlane.xlu0 %99 }
  0xd2   :  { %v118_v54 = vmul.f32 0.0002610966, %v100_v31 }
  0xd3   :  { %v68_v30 = vpop.xlane.xlu1 %67 }
  0xd4   :  { %v87_v37 = vmul.f32 0.0002610966, %v68_v30 }
  0xd7   :  { %v98_v32 = vpop.xlane.xlu1 %97 }
  0xd8   :  { %v117_v42 = vmul.f32 0.0002610966, %v98_v32 }
 0x124   :  { %v54_v33 = vpop.xlane.xlu0 %53 }
 0x125   :  { %v84_v34 = vpop.xlane.xlu1 %83  ;;  %v59_v38 = vmul.f32 0.8997389, %v54_v33 }
 0x126   :  { %v89_v35 = vmul.f32 0.8997389, %v84_v34 }
 0x127   :  { %v61_v45 = vadd.f32 %v59_v38, %v57_v39 }
 0x128   :  { %v56_v36 = vpop.xlane.xlu0 %55  ;;  %v91_v40 = vadd.f32 %v89_v35, %v87_v37 }
 0x129   :  { %v60_v46 = vmul.f32 0.8997389, %v56_v36 }
 0x12a   :  { %v93_v50 = vadd.f32 %v91_v40, %v61_v45 }
 0x12b   :  { %v62_v55 = vadd.f32 %v60_v46, %v58_v49 }
 0x12c   :  { %v86_v43 = vpop.xlane.xlu0 %85  ;;  %v114_v44 = vpop.xlane.xlu1 %113 }
 0x12d   :  { %v90_v47 = vmul.f32 0.8997389, %v86_v43  ;;  %v119_v48 = vmul.f32 0.8997389, %v114_v44 }
 0x12f   :  { %v92_v51 = vadd.f32 %v90_v47, %v88_v41  ;;  %v121_v52 = vadd.f32 %v119_v48, %v117_v42 }
 0x130   :  { %v116_v53 = vpop.xlane.xlu0 %115 }
 0x131   :  { %v123_v56 = vadd.f32 %v121_v52, %v93_v50  ;;  %v120_v57 = vmul.f32 0.8997389, %v116_v53  ;;  %v94_v58 = vadd.f32 %v92_v51, %v62_v55 }
 0x133   :  { %v122_v59 = vadd.f32 %v120_v57, %v118_v54  ;;  %v135_v61 = vsel %vm129_vm6, %v123_v56, 0.0 }
 0x134   :  { %v140_v63 = vsel %vm139_vm8, %v135_v61, 0.0 }
 0x135   :  { %v124_v60 = vadd.f32 %v122_v59, %v94_v58 }
 0x137   :  { %v136_v62 = vsel %vm130_vm7, %v124_v60, 0.0 }
 0x138   :  { %v141_v0 = vsel %vm139_vm8, %v136_v62, 0.0 }
 0x139   :  { %v142_v3 = vadd.f32 %v141_v0, %v140_v63 }
 0x13b   :  { %143 = vadd.xlane.f32.xlu1 %v142_v3 }
 0x1c8   :  { %v144_v4 = vpop.xlane.xlu1 %143 }
 0x1c9   :  { %v145_v5 = vrot.slane %v144_v4, 4 }
 0x1cb   :  { %v146_v6 = vadd.f32 %v145_v5, %v144_v4 }
 0x1cd   :  { %v147_v7 = vrot.slane %v146_v6, 2 }
 0x1cf   :  { %v148_v8 = vadd.f32 %v147_v7, %v146_v6 }
 0x1d1   :  { %v149_v9 = vrot.slane %v148_v8, 1 }
 0x1d3   :  { %v150_v10 = vadd.f32 %v149_v9, %v148_v8 }
 0x1d5   :  { %175 = vpush %v150_v10 }
 0x206   :  { %s176_s27 = spop %175 }
 0x207   :  { %v152_v1 = vstv %s176_s27 }
 0x208   :  { %v153_v2 = vsub.f32 0.0, %v152_v1 }
 0x20a   :  { %155 = vst.msk [vmem:[#allocation5] sm:$0x1] %vm154_vm9, %v153_v2 }
 0x20b   :  { %217 = shalt.err (!%p214_p12)
}
 0x20c   :  { %s218_s4 = scalar_lea.hbm %s296_s2, 16 }
 0x20d   :  { %p219_p13 = scmp.ne.s32.totalorder %s296_s2, %s218_s4  ;;  %p222_p0 = scmp.lt.u32.totalorder %s218_s4, %s296_s2 }
 0x20f   :  { %p224_p1 = pnand %p222_p0, %p219_p13 }
 0x211   :  { %227 = shalt.err (!%p224_p1)
}
 0x212   :  { %165 = dma.vmem_to_hbm [thread:$0]  %s163_s1, 16, %s296_s2, [#allocation4]  }
 0x213   :  { %230 = dma.done.wait [#allocation4], 16  }
 0x214   :  { %231 = vsyncadd [#allocation4], 4294967280 }
 0x215   :  { %169 = vsyncpa [#allocation3], 1 }
 0x216   :  { %170 = vsyncpa [#allocation4], 1 }

</bundles_post_ra>
